<compile_context>
chip_gen: v6e
topology: v6e:2x2x1
jax: 0.10.0
libtpu: 0.0.40
codegen_flags: <defaults>
</compile_context>

<pallas_src>
import functools
import math

import jax
import jax.numpy as jnp
import numpy as np
from jax.experimental import pallas as pl
from jax.experimental.pallas import tpu as pltpu

_LN2 = math.log(2.0)


def _laplace_nll_kernel(y_ref, ls_ref, mask_ref, tot_ref, cnt_ref, *, eps: float):
    """One N-tile (128 lanes) of the Laplace NLL.

    y_ref   : [D, T, TN]      target, lane-dense in N
    ls_ref  : [F, 2D, T, TN]  loc (first D rows) and scale (last D rows), all modes
    mask_ref: [T, TN]         1.0 where reg_mask, else 0.0 (padding lanes are 0)
    tot_ref : [1, 1, TN]      per-node masked NLL sum (over D and T)
    cnt_ref : [1, 1, TN]      per-node valid-timestep count (sum of mask over T)
    """
    num_modes = ls_ref.shape[0]
    D = ls_ref.shape[1] // 2

    y = y_ref[...]                # [D, T, TN]
    mask = mask_ref[...]          # [T, TN]
    valid = mask > 0.0            # bool [T, TN]

    # Fused single pass over modes: update running best cost AND the selected
    # loc/scale under the same predicate, so every mode slab is read exactly once.
    best_cost = None
    loc_sel = None
    scale_sel = None
    for f in range(num_modes):
        ls_f = ls_ref[f]                              # [2D, T, TN]
        loc_f = ls_f[:D]                              # [D, T, TN]
        scale_f = ls_f[D:]                            # [D, T, TN]
        d = y - loc_f
        diff = jnp.sqrt(jnp.sum(d * d, axis=0))       # [T, TN]  L2 norm over D
        diff = jnp.where(valid, diff, 0.0)            # where-mask: no 0*inf NaNs
        # argmin_F of mean_T(masked diff) == argmin_F of sum_T (shared /T factor).
        cost = jnp.sum(diff, axis=0, keepdims=True)   # [1, TN]
        if f == 0:
            best_cost = cost
            loc_sel = loc_f
            scale_sel = scale_f
        else:
            better = cost < best_cost                 # strict < => first-index tie-break
            best_cost = jnp.where(better, cost, best_cost)
            loc_sel = jnp.where(better, loc_f, loc_sel)
            scale_sel = jnp.where(better, scale_f, scale_sel)

    # NLL computed once, on the selected mode only (log/div on EUP run 1x, not Fx).
    scale_c = jnp.maximum(scale_sel, eps)                               # clamp(min=eps)
    nll = (jnp.log(scale_c) + _LN2) + jnp.abs(y - loc_sel) / scale_c    # [D, T, TN]
    nll = jnp.where(valid, nll, 0.0)                                    # mask broadcasts over D

    node_nll = jnp.sum(jnp.sum(nll, axis=0), axis=0, keepdims=True)     # [1, TN] sublane reduces
    node_cnt = jnp.sum(mask, axis=0, keepdims=True)                     # [1, TN]
    tot_ref[...] = node_nll.reshape(tot_ref.shape)
    cnt_ref[...] = node_cnt.reshape(cnt_ref.shape)


def laplace_nll_loss(target, loc_scale, reg_mask, eps: float = 1e-6, tile_n: int = 128):
    """target: [N,T,D] f32, loc_scale: [F,N,T,2D] f32, reg_mask: [N,T] bool -> scalar f32."""
    N, T, D = target.shape
    F = loc_scale.shape[0]
    assert loc_scale.shape == (F, N, T, 2 * D)
    assert reg_mask.shape == (N, T)

    grid_n = pl.cdiv(N, tile_n)
    n_pad = grid_n * tile_n
    pad = n_pad - N

    # Glue (single transpose per tensor) into the lane-dense [..., T, N] layout.
    # loc/scale are split *inside* the kernel by indexing the 2D axis -> loc_scale is
    # read/written once here instead of twice (two strided slices + two transposes).
    y_k = jnp.transpose(target.astype(jnp.float32), (2, 1, 0))           # [D, T, N]
    ls_k = jnp.transpose(loc_scale.astype(jnp.float32), (0, 3, 2, 1))    # [F, 2D, T, N]
    mask_k = jnp.transpose(reg_mask, (1, 0)).astype(jnp.float32)         # [T, N]

    if pad:
        y_k = jnp.pad(y_k, ((0, 0), (0, 0), (0, pad)))
        ls_k = jnp.pad(ls_k, ((0, 0), (0, 0), (0, 0), (0, pad)))
        mask_k = jnp.pad(mask_k, ((0, 0), (0, pad)))                     # padded lanes -> mask 0

    kernel = functools.partial(_laplace_nll_kernel, eps=float(eps))

    out_tot, out_cnt = pl.pallas_call(
        kernel,
        out_shape=(
            jax.ShapeDtypeStruct((grid_n, 1, tile_n), jnp.float32),
            jax.ShapeDtypeStruct((grid_n, 1, tile_n), jnp.float32),
        ),
        grid_spec=pltpu.PrefetchScalarGridSpec(
            num_scalar_prefetch=0,
            grid=(grid_n,),
            in_specs=[
                pl.BlockSpec((D, T, tile_n), lambda i: (0, 0, i)),
                pl.BlockSpec((F, 2 * D, T, tile_n), lambda i: (0, 0, 0, i)),
                pl.BlockSpec((T, tile_n), lambda i: (0, i)),
            ],
            out_specs=[
                pl.BlockSpec((1, 1, tile_n), lambda i: (i, 0, 0)),
                pl.BlockSpec((1, 1, tile_n), lambda i: (i, 0, 0)),
            ],
        ),
        compiler_params=pltpu.CompilerParams(
            dimension_semantics=("parallel",),          # shards N-tiles across TCs on v7x
            vmem_limit_bytes=32 * 1024 * 1024,          # well above the ~2 MiB/tile needed
        ),
    )(y_k, ls_k, mask_k)

    total = jnp.sum(out_tot)
    num_valid = jnp.sum(out_cnt)
    return total / (num_valid * D)


def laplace_nll_loss_ref(target, loc_scale, reg_mask, eps: float = 1e-6):
    """Pure-JAX reference mirroring the PyTorch forward."""
    N, T, D = target.shape
    loc = loc_scale[..., :D]
    scale = loc_scale[..., D:]
    diff = jnp.linalg.norm(target[None] - loc, axis=-1)               # [F, N, T]
    diff_ = jnp.where(reg_mask[None], diff, 0.0)
    best_mode = jnp.argmin(diff_.mean(-1), axis=0)                    # [N]
    n_idx = jnp.arange(N)
    loc_s = loc[best_mode, n_idx]                                     # [N, T, D]
    scale_s = jnp.maximum(scale[best_mode, n_idx], eps)
    nll = jnp.log(2.0 * scale_s) + jnp.abs(target - loc_s) / scale_s  # [N, T, D]
    m = reg_mask[..., None]
    return jnp.sum(jnp.where(m, nll, 0.0)) / (jnp.sum(reg_mask) * D)


if __name__ == "__main__":
    # F modes, N nodes, T timesteps, D=2 coords. N=200 pads to 256 -> 2 lane-tiles of 128,
    # exercising both the grid/index maps and the padding path.
    F, N, T, D = 6, 200, 16, 2
    key = jax.random.PRNGKey(0)
    k_y, k_loc, k_scale, k_mask = jax.random.split(key, 4)

    target = jax.random.normal(k_y, (N, T, D), dtype=jnp.float32)
    loc_part = jax.random.normal(k_loc, (F, N, T, D), dtype=jnp.float32)
    scale_part = jax.nn.softplus(jax.random.normal(k_scale, (F, N, T, D), dtype=jnp.float32)) + 0.05
    loc_scale = jnp.concatenate([loc_part, scale_part], axis=-1)      # [F, N, T, 2D]
    reg_mask = jax.random.bernoulli(k_mask, 0.7, (N, T))
    reg_mask = reg_mask.at[:, 0].set(True)                            # guarantee >=1 valid per node

    loss = jax.block_until_ready(laplace_nll_loss(target, loc_scale, reg_mask))
    ref = jax.block_until_ready(laplace_nll_loss_ref(target, loc_scale, reg_mask))

    if np.allclose(np.asarray(loss), np.asarray(ref), rtol=1e-5, atol=1e-5):
        print("KERNEL_OK")
    else:
        raise AssertionError(f"mismatch: pallas={float(loss)} ref={float(ref)}")
</pallas_src>

<mosaic_0001>
module attributes {stable_mosaic.version = 11 : i64} {
  func.func @_laplace_nll_kernel(%arg0: i32, %arg1: memref<2x16x128xf32, #tpu.memory_space<vmem>>, %arg2: memref<6x4x16x128xf32, #tpu.memory_space<vmem>>, %arg3: memref<16x128xf32, #tpu.memory_space<vmem>>, %arg4: memref<1x1x128xf32, #tpu.memory_space<vmem>>, %arg5: memref<1x1x128xf32, #tpu.memory_space<vmem>>) attributes {dimension_semantics = [#tpu.dimension_semantics<parallel>], iteration_bounds = array<i64: 2>, scalar_prefetch = 0 : i64, scratch_operands = 0 : i64, tpu.core_type = #tpu.core_type<tc>, window_params = [{transform_indices = @transform_0, window_bounds = array<i64: 2, 16, 128>}, {transform_indices = @transform_1, window_bounds = array<i64: 6, 4, 16, 128>}, {transform_indices = @transform_2, window_bounds = array<i64: 16, 128>}, {transform_indices = @transform_3, window_bounds = array<i64: 1, 1, 128>}, {transform_indices = @transform_4, window_bounds = array<i64: 1, 1, 128>}]} {
    %c0 = arith.constant 0 : index
    %c0_0 = arith.constant 0 : index
    %c0_1 = arith.constant 0 : index
    %0 = vector.load %arg1[%c0, %c0_0, %c0_1] : memref<2x16x128xf32, #tpu.memory_space<vmem>>, vector<2x16x128xf32>
    %c0_2 = arith.constant 0 : index
    %c0_3 = arith.constant 0 : index
    %1 = vector.load %arg3[%c0_2, %c0_3] : memref<16x128xf32, #tpu.memory_space<vmem>>, vector<16x128xf32>
    %cst = arith.constant 0.000000e+00 : f32
    %2 = vector.broadcast %cst : f32 to vector<16x128xf32>
    %3 = arith.cmpf ogt, %1, %2 : vector<16x128xf32>
    %c0_4 = arith.constant 0 : index
    %c0_5 = arith.constant 0 : index
    %c0_6 = arith.constant 0 : index
    %c0_7 = arith.constant 0 : index
    %4 = vector.load %arg2[%c0_4, %c0_5, %c0_6, %c0_7] : memref<6x4x16x128xf32, #tpu.memory_space<vmem>>, vector<1x4x16x128xf32>
    %5 = vector.shape_cast %4 : vector<1x4x16x128xf32> to vector<4x16x128xf32>
    %6 = vector.extract_strided_slice %5 {offsets = [0, 0, 0], sizes = [2, 16, 128], strides = [1, 1, 1]} : vector<4x16x128xf32> to vector<2x16x128xf32>
    %7 = vector.extract_strided_slice %5 {offsets = [2, 0, 0], sizes = [2, 16, 128], strides = [1, 1, 1]} : vector<4x16x128xf32> to vector<2x16x128xf32>
    %8 = arith.subf %0, %6 : vector<2x16x128xf32>
    %9 = arith.mulf %8, %8 : vector<2x16x128xf32>
    %cst_8 = arith.constant dense<0.000000e+00> : vector<16x128xf32>
    %10 = vector.multi_reduction <add>, %9, %cst_8 [0] : vector<2x16x128xf32> to vector<16x128xf32>
    %11 = math.sqrt %10 : vector<16x128xf32>
    %cst_9 = arith.constant 0.000000e+00 : f32
    %12 = vector.broadcast %cst_9 : f32 to vector<16x128xf32>
    %13 = arith.select %3, %11, %12 : vector<16x128xi1>, vector<16x128xf32>
    %cst_10 = arith.constant dense<0.000000e+00> : vector<128xf32>
    %14 = vector.multi_reduction <add>, %13, %cst_10 [0] : vector<16x128xf32> to vector<128xf32>
    %15 = vector.shape_cast %14 : vector<128xf32> to vector<1x128xf32>
    %c1 = arith.constant 1 : index
    %c0_11 = arith.constant 0 : index
    %c0_12 = arith.constant 0 : index
    %c0_13 = arith.constant 0 : index
    %16 = vector.load %arg2[%c1, %c0_11, %c0_12, %c0_13] : memref<6x4x16x128xf32, #tpu.memory_space<vmem>>, vector<1x4x16x128xf32>
    %17 = vector.shape_cast %16 : vector<1x4x16x128xf32> to vector<4x16x128xf32>
    %18 = vector.extract_strided_slice %17 {offsets = [0, 0, 0], sizes = [2, 16, 128], strides = [1, 1, 1]} : vector<4x16x128xf32> to vector<2x16x128xf32>
    %19 = vector.extract_strided_slice %17 {offsets = [2, 0, 0], sizes = [2, 16, 128], strides = [1, 1, 1]} : vector<4x16x128xf32> to vector<2x16x128xf32>
    %20 = arith.subf %0, %18 : vector<2x16x128xf32>
    %21 = arith.mulf %20, %20 : vector<2x16x128xf32>
    %cst_14 = arith.constant dense<0.000000e+00> : vector<16x128xf32>
    %22 = vector.multi_reduction <add>, %21, %cst_14 [0] : vector<2x16x128xf32> to vector<16x128xf32>
    %23 = math.sqrt %22 : vector<16x128xf32>
    %cst_15 = arith.constant 0.000000e+00 : f32
    %24 = vector.broadcast %cst_15 : f32 to vector<16x128xf32>
    %25 = arith.select %3, %23, %24 : vector<16x128xi1>, vector<16x128xf32>
    %cst_16 = arith.constant dense<0.000000e+00> : vector<128xf32>
    %26 = vector.multi_reduction <add>, %25, %cst_16 [0] : vector<16x128xf32> to vector<128xf32>
    %27 = vector.shape_cast %26 : vector<128xf32> to vector<1x128xf32>
    %28 = arith.cmpf olt, %27, %15 : vector<1x128xf32>
    %29 = arith.select %28, %27, %15 : vector<1x128xi1>, vector<1x128xf32>
    %30 = vector.shape_cast %28 : vector<1x128xi1> to vector<1x1x128xi1>
    %31 = vector.broadcast %30 : vector<1x1x128xi1> to vector<2x16x128xi1>
    %32 = arith.select %31, %18, %6 : vector<2x16x128xi1>, vector<2x16x128xf32>
    %33 = vector.shape_cast %28 : vector<1x128xi1> to vector<1x1x128xi1>
    %34 = vector.broadcast %33 : vector<1x1x128xi1> to vector<2x16x128xi1>
    %35 = arith.select %34, %19, %7 : vector<2x16x128xi1>, vector<2x16x128xf32>
    %c2 = arith.constant 2 : index
    %c0_17 = arith.constant 0 : index
    %c0_18 = arith.constant 0 : index
    %c0_19 = arith.constant 0 : index
    %36 = vector.load %arg2[%c2, %c0_17, %c0_18, %c0_19] : memref<6x4x16x128xf32, #tpu.memory_space<vmem>>, vector<1x4x16x128xf32>
    %37 = vector.shape_cast %36 : vector<1x4x16x128xf32> to vector<4x16x128xf32>
    %38 = vector.extract_strided_slice %37 {offsets = [0, 0, 0], sizes = [2, 16, 128], strides = [1, 1, 1]} : vector<4x16x128xf32> to vector<2x16x128xf32>
    %39 = vector.extract_strided_slice %37 {offsets = [2, 0, 0], sizes = [2, 16, 128], strides = [1, 1, 1]} : vector<4x16x128xf32> to vector<2x16x128xf32>
    %40 = arith.subf %0, %38 : vector<2x16x128xf32>
    %41 = arith.mulf %40, %40 : vector<2x16x128xf32>
    %cst_20 = arith.constant dense<0.000000e+00> : vector<16x128xf32>
    %42 = vector.multi_reduction <add>, %41, %cst_20 [0] : vector<2x16x128xf32> to vector<16x128xf32>
    %43 = math.sqrt %42 : vector<16x128xf32>
    %cst_21 = arith.constant 0.000000e+00 : f32
    %44 = vector.broadcast %cst_21 : f32 to vector<16x128xf32>
    %45 = arith.select %3, %43, %44 : vector<16x128xi1>, vector<16x128xf32>
    %cst_22 = arith.constant dense<0.000000e+00> : vector<128xf32>
    %46 = vector.multi_reduction <add>, %45, %cst_22 [0] : vector<16x128xf32> to vector<128xf32>
    %47 = vector.shape_cast %46 : vector<128xf32> to vector<1x128xf32>
    %48 = arith.cmpf olt, %47, %29 : vector<1x128xf32>
    %49 = arith.select %48, %47, %29 : vector<1x128xi1>, vector<1x128xf32>
    %50 = vector.shape_cast %48 : vector<1x128xi1> to vector<1x1x128xi1>
    %51 = vector.broadcast %50 : vector<1x1x128xi1> to vector<2x16x128xi1>
    %52 = arith.select %51, %38, %32 : vector<2x16x128xi1>, vector<2x16x128xf32>
    %53 = vector.shape_cast %48 : vector<1x128xi1> to vector<1x1x128xi1>
    %54 = vector.broadcast %53 : vector<1x1x128xi1> to vector<2x16x128xi1>
    %55 = arith.select %54, %39, %35 : vector<2x16x128xi1>, vector<2x16x128xf32>
    %c3 = arith.constant 3 : index
    %c0_23 = arith.constant 0 : index
    %c0_24 = arith.constant 0 : index
    %c0_25 = arith.constant 0 : index
    %56 = vector.load %arg2[%c3, %c0_23, %c0_24, %c0_25] : memref<6x4x16x128xf32, #tpu.memory_space<vmem>>, vector<1x4x16x128xf32>
    %57 = vector.shape_cast %56 : vector<1x4x16x128xf32> to vector<4x16x128xf32>
    %58 = vector.extract_strided_slice %57 {offsets = [0, 0, 0], sizes = [2, 16, 128], strides = [1, 1, 1]} : vector<4x16x128xf32> to vector<2x16x128xf32>
    %59 = vector.extract_strided_slice %57 {offsets = [2, 0, 0], sizes = [2, 16, 128], strides = [1, 1, 1]} : vector<4x16x128xf32> to vector<2x16x128xf32>
    %60 = arith.subf %0, %58 : vector<2x16x128xf32>
    %61 = arith.mulf %60, %60 : vector<2x16x128xf32>
    %cst_26 = arith.constant dense<0.000000e+00> : vector<16x128xf32>
    %62 = vector.multi_reduction <add>, %61, %cst_26 [0] : vector<2x16x128xf32> to vector<16x128xf32>
    %63 = math.sqrt %62 : vector<16x128xf32>
    %cst_27 = arith.constant 0.000000e+00 : f32
    %64 = vector.broadcast %cst_27 : f32 to vector<16x128xf32>
    %65 = arith.select %3, %63, %64 : vector<16x128xi1>, vector<16x128xf32>
    %cst_28 = arith.constant dense<0.000000e+00> : vector<128xf32>
    %66 = vector.multi_reduction <add>, %65, %cst_28 [0] : vector<16x128xf32> to vector<128xf32>
    %67 = vector.shape_cast %66 : vector<128xf32> to vector<1x128xf32>
    %68 = arith.cmpf olt, %67, %49 : vector<1x128xf32>
    %69 = arith.select %68, %67, %49 : vector<1x128xi1>, vector<1x128xf32>
    %70 = vector.shape_cast %68 : vector<1x128xi1> to vector<1x1x128xi1>
    %71 = vector.broadcast %70 : vector<1x1x128xi1> to vector<2x16x128xi1>
    %72 = arith.select %71, %58, %52 : vector<2x16x128xi1>, vector<2x16x128xf32>
    %73 = vector.shape_cast %68 : vector<1x128xi1> to vector<1x1x128xi1>
    %74 = vector.broadcast %73 : vector<1x1x128xi1> to vector<2x16x128xi1>
    %75 = arith.select %74, %59, %55 : vector<2x16x128xi1>, vector<2x16x128xf32>
    %c4 = arith.constant 4 : index
    %c0_29 = arith.constant 0 : index
    %c0_30 = arith.constant 0 : index
    %c0_31 = arith.constant 0 : index
    %76 = vector.load %arg2[%c4, %c0_29, %c0_30, %c0_31] : memref<6x4x16x128xf32, #tpu.memory_space<vmem>>, vector<1x4x16x128xf32>
    %77 = vector.shape_cast %76 : vector<1x4x16x128xf32> to vector<4x16x128xf32>
    %78 = vector.extract_strided_slice %77 {offsets = [0, 0, 0], sizes = [2, 16, 128], strides = [1, 1, 1]} : vector<4x16x128xf32> to vector<2x16x128xf32>
    %79 = vector.extract_strided_slice %77 {offsets = [2, 0, 0], sizes = [2, 16, 128], strides = [1, 1, 1]} : vector<4x16x128xf32> to vector<2x16x128xf32>
    %80 = arith.subf %0, %78 : vector<2x16x128xf32>
    %81 = arith.mulf %80, %80 : vector<2x16x128xf32>
    %cst_32 = arith.constant dense<0.000000e+00> : vector<16x128xf32>
    %82 = vector.multi_reduction <add>, %81, %cst_32 [0] : vector<2x16x128xf32> to vector<16x128xf32>
    %83 = math.sqrt %82 : vector<16x128xf32>
    %cst_33 = arith.constant 0.000000e+00 : f32
    %84 = vector.broadcast %cst_33 : f32 to vector<16x128xf32>
    %85 = arith.select %3, %83, %84 : vector<16x128xi1>, vector<16x128xf32>
    %cst_34 = arith.constant dense<0.000000e+00> : vector<128xf32>
    %86 = vector.multi_reduction <add>, %85, %cst_34 [0] : vector<16x128xf32> to vector<128xf32>
    %87 = vector.shape_cast %86 : vector<128xf32> to vector<1x128xf32>
    %88 = arith.cmpf olt, %87, %69 : vector<1x128xf32>
    %89 = arith.select %88, %87, %69 : vector<1x128xi1>, vector<1x128xf32>
    %90 = vector.shape_cast %88 : vector<1x128xi1> to vector<1x1x128xi1>
    %91 = vector.broadcast %90 : vector<1x1x128xi1> to vector<2x16x128xi1>
    %92 = arith.select %91, %78, %72 : vector<2x16x128xi1>, vector<2x16x128xf32>
    %93 = vector.shape_cast %88 : vector<1x128xi1> to vector<1x1x128xi1>
    %94 = vector.broadcast %93 : vector<1x1x128xi1> to vector<2x16x128xi1>
    %95 = arith.select %94, %79, %75 : vector<2x16x128xi1>, vector<2x16x128xf32>
    %c5 = arith.constant 5 : index
    %c0_35 = arith.constant 0 : index
    %c0_36 = arith.constant 0 : index
    %c0_37 = arith.constant 0 : index
    %96 = vector.load %arg2[%c5, %c0_35, %c0_36, %c0_37] : memref<6x4x16x128xf32, #tpu.memory_space<vmem>>, vector<1x4x16x128xf32>
    %97 = vector.shape_cast %96 : vector<1x4x16x128xf32> to vector<4x16x128xf32>
    %98 = vector.extract_strided_slice %97 {offsets = [0, 0, 0], sizes = [2, 16, 128], strides = [1, 1, 1]} : vector<4x16x128xf32> to vector<2x16x128xf32>
    %99 = vector.extract_strided_slice %97 {offsets = [2, 0, 0], sizes = [2, 16, 128], strides = [1, 1, 1]} : vector<4x16x128xf32> to vector<2x16x128xf32>
    %100 = arith.subf %0, %98 : vector<2x16x128xf32>
    %101 = arith.mulf %100, %100 : vector<2x16x128xf32>
    %cst_38 = arith.constant dense<0.000000e+00> : vector<16x128xf32>
    %102 = vector.multi_reduction <add>, %101, %cst_38 [0] : vector<2x16x128xf32> to vector<16x128xf32>
    %103 = math.sqrt %102 : vector<16x128xf32>
    %cst_39 = arith.constant 0.000000e+00 : f32
    %104 = vector.broadcast %cst_39 : f32 to vector<16x128xf32>
    %105 = arith.select %3, %103, %104 : vector<16x128xi1>, vector<16x128xf32>
    %cst_40 = arith.constant dense<0.000000e+00> : vector<128xf32>
    %106 = vector.multi_reduction <add>, %105, %cst_40 [0] : vector<16x128xf32> to vector<128xf32>
    %107 = vector.shape_cast %106 : vector<128xf32> to vector<1x128xf32>
    %108 = arith.cmpf olt, %107, %89 : vector<1x128xf32>
    %109 = vector.shape_cast %108 : vector<1x128xi1> to vector<1x1x128xi1>
    %110 = vector.broadcast %109 : vector<1x1x128xi1> to vector<2x16x128xi1>
    %111 = arith.select %110, %98, %92 : vector<2x16x128xi1>, vector<2x16x128xf32>
    %112 = vector.shape_cast %108 : vector<1x128xi1> to vector<1x1x128xi1>
    %113 = vector.broadcast %112 : vector<1x1x128xi1> to vector<2x16x128xi1>
    %114 = arith.select %113, %99, %95 : vector<2x16x128xi1>, vector<2x16x128xf32>
    %cst_41 = arith.constant 9.99999997E-7 : f32
    %115 = vector.broadcast %cst_41 : f32 to vector<2x16x128xf32>
    %116 = arith.maximumf %114, %115 : vector<2x16x128xf32>
    %117 = math.log %116 : vector<2x16x128xf32>
    %cst_42 = arith.constant 0.693147182 : f32
    %118 = vector.broadcast %cst_42 : f32 to vector<2x16x128xf32>
    %119 = arith.addf %117, %118 : vector<2x16x128xf32>
    %120 = arith.subf %0, %111 : vector<2x16x128xf32>
    %121 = math.absf %120 : vector<2x16x128xf32>
    %122 = arith.divf %121, %116 : vector<2x16x128xf32>
    %123 = arith.addf %119, %122 : vector<2x16x128xf32>
    %cst_43 = arith.constant 0.000000e+00 : f32
    %124 = vector.shape_cast %3 : vector<16x128xi1> to vector<1x16x128xi1>
    %125 = vector.broadcast %124 : vector<1x16x128xi1> to vector<2x16x128xi1>
    %126 = vector.broadcast %cst_43 : f32 to vector<2x16x128xf32>
    %127 = arith.select %125, %123, %126 : vector<2x16x128xi1>, vector<2x16x128xf32>
    %cst_44 = arith.constant dense<0.000000e+00> : vector<16x128xf32>
    %128 = vector.multi_reduction <add>, %127, %cst_44 [0] : vector<2x16x128xf32> to vector<16x128xf32>
    %cst_45 = arith.constant dense<0.000000e+00> : vector<128xf32>
    %129 = vector.multi_reduction <add>, %128, %cst_45 [0] : vector<16x128xf32> to vector<128xf32>
    %130 = vector.shape_cast %129 : vector<128xf32> to vector<1x128xf32>
    %cst_46 = arith.constant dense<0.000000e+00> : vector<128xf32>
    %131 = vector.multi_reduction <add>, %1, %cst_46 [0] : vector<16x128xf32> to vector<128xf32>
    %132 = vector.shape_cast %131 : vector<128xf32> to vector<1x128xf32>
    %133 = vector.shape_cast %130 : vector<1x128xf32> to vector<1x1x128xf32>
    %c0_47 = arith.constant 0 : index
    %c0_48 = arith.constant 0 : index
    %c0_49 = arith.constant 0 : index
    %134 = vector.load %arg4[%c0_47, %c0_48, %c0_49] : memref<1x1x128xf32, #tpu.memory_space<vmem>>, vector<1x1x128xf32>
    tpu.vector_store %arg4[%c0_47, %c0_48, %c0_49], %133 {strides = array<i32>} : memref<1x1x128xf32, #tpu.memory_space<vmem>>, vector<1x1x128xf32>,
    %135 = vector.shape_cast %132 : vector<1x128xf32> to vector<1x1x128xf32>
    %c0_50 = arith.constant 0 : index
    %c0_51 = arith.constant 0 : index
    %c0_52 = arith.constant 0 : index
    %136 = vector.load %arg5[%c0_50, %c0_51, %c0_52] : memref<1x1x128xf32, #tpu.memory_space<vmem>>, vector<1x1x128xf32>
    tpu.vector_store %arg5[%c0_50, %c0_51, %c0_52], %135 {strides = array<i32>} : memref<1x1x128xf32, #tpu.memory_space<vmem>>, vector<1x1x128xf32>,
    return
  }
  func.func @transform_0(%arg0: i32) -> (i32, i32, i32) {
    %c0_i32 = arith.constant 0 : i32
    %c0_i32_0 = arith.constant 0 : i32
    %c0_i32_1 = arith.constant 0 : i32
    return %c0_i32, %c0_i32_0, %arg0 : i32, i32, i32
  }
  func.func @transform_1(%arg0: i32) -> (i32, i32, i32, i32) {
    %c0_i32 = arith.constant 0 : i32
    %c0_i32_0 = arith.constant 0 : i32
    %c0_i32_1 = arith.constant 0 : i32
    %c0_i32_2 = arith.constant 0 : i32
    return %c0_i32, %c0_i32_0, %c0_i32_1, %arg0 : i32, i32, i32, i32
  }
  func.func @transform_2(%arg0: i32) -> (i32, i32) {
    %c0_i32 = arith.constant 0 : i32
    %c0_i32_0 = arith.constant 0 : i32
    return %c0_i32, %arg0 : i32, i32
  }
  func.func @transform_3(%arg0: i32) -> (i32, i32, i32) {
    %c0_i32 = arith.constant 0 : i32
    %c0_i32_0 = arith.constant 0 : i32
    %c0_i32_1 = arith.constant 0 : i32
    return %arg0, %c0_i32, %c0_i32_0 : i32, i32, i32
  }
  func.func @transform_4(%arg0: i32) -> (i32, i32, i32) {
    %c0_i32 = arith.constant 0 : i32
    %c0_i32_0 = arith.constant 0 : i32
    %c0_i32_1 = arith.constant 0 : i32
    return %arg0, %c0_i32, %c0_i32_0 : i32, i32, i32
  }
}

</mosaic_0001>

<bundles_post_ra>
// kernel: tpu_custom_call.1
= control target key start
LH: loop header
LB: loop body
LE: loop exit
PB: predicated region body
PF: predicated region fallthrough
CT: control target
= control target key end

     0   :  { %s1957_s0 = inlined_call_operand.hbm [shape: f32[2,16,256], index: 0, kind: input, shape index: {}]   ;;  %s1958_s1 = inlined_call_operand.hbm [shape: f32[6,4,16,256], index: 1, kind: input, shape index: {}]   ;;  %s1959_s2 = inlined_call_operand.hbm [shape: f32[16,256], index: 2, kind: input, shape index: {}]   ;;  %s1960_s3 = inlined_call_operand.hbm [shape: f32[2,1,128], index: 3, kind: output, shape index: {0}]   ;;  %s1961_s4 = inlined_call_operand.hbm [shape: f32[2,1,128], index: 4, kind: output, shape index: {1}]  }
   0x1   :  { %1970 = sst [smem:[#allocation19_spill]] %s1958_s1 }
   0x2   :  { %10 = vsyncpa [#allocation3], 0 }
   0x3   :  { %12 = vsyncpa [#allocation3 + $0x1], 0 }
   0x4   :  { %13 = vsyncpa [#allocation6], 0 }
   0x5   :  { %15 = vsyncpa [#allocation6 + $0x1], 0 }
   0x6   :  { %16 = vsyncpa [#allocation4], 0 }
   0x7   :  { %18 = vsyncpa [#allocation4 + $0x1], 0 }
   0x8   :  { %19 = vsyncpa [#allocation10], 0 }
   0x9   :  { %21 = vsyncpa [#allocation10 + $0x1], 0  ;;  %s1224_s15 = smov 0   ;;  %s1226_s16 = smov 0  }
   0xa   :  { %s1228_s17 = smov 0   ;;  %s1230_s18 = smov 0  }
   0xb LB: > { %1971 = sst [smem:[#allocation15_spill]] %s1185_s17  ;;  %s1245_s19 = sadd.s32 4294967295, %s1189_s18   ;;  %s1189_s18 = sphi %s1230_s18, %s2000_s18   ;;  %s1185_s17 = sphi %s1228_s17, %s2002_s17   ;;  %s1181_s16 = sphi %s1226_s16, %s2004_s16   ;;  %s1177_s15 = sphi %s1224_s15, %s2003_s15  }
   0xc   : > { %1972 = sst [smem:[#allocation16_spill]] %s1189_s18  ;;  %s846_s20 = sadd.s32 4294967294, %s1189_s18  }
   0xd   : > { %s1249_s21 = sadd.s32 1, %s1189_s18   ;;  %s34_s22 = sadd.s32 1, %s1185_s17 }
   0xe   : > { %1973 = sst [smem:[#allocation17_spill]] %s1249_s21  ;;  %s31_s23 = ssub.s32 %s1189_s18, %s1249_s21 }
   0xf   : > { %p41_p0 = scmp.ne.s32.totalorder %s1185_s17, %s1181_s16  ;;  %p32_p1 = scmp.eq.s32.totalorder %s31_s23, 0 }
  0x10   : > { %p42_p2 = scmp.eq.s32.totalorder %s1189_s18, 0  ;;  %p47_p3 = scmp.ne.s32.totalorder %s1181_s16, %s1177_s15 }
  0x11   : > { %p48_p4 = scmp.eq.s32.totalorder %s1245_s19, 0  ;;  %p123_p7 = scmp.eq.s32.totalorder %s1245_s19, 1 }
  0x12   : > { %s1261_s24 = scalar_select %p32_p1, %s1185_s17, %s34_s22  }
  0x13   : > { %p43_p5 = por %p42_p2, %p41_p0  ;;  %p1263_p6 = por %p48_p4, %p47_p3 }
  0x14   : > { %1974 = sst [smem:[#allocation18_spill]] %s1261_s24  ;;  %p129_p8 = scmp.eq.s32.totalorder %s846_s20, 1 }
  0x15   : > { %s1975_s25 = scalar_select %p1263_p6, 1, 0 }
  0x16   : > { %p930_p10 = scmp.lt.s32.totalorder %s1189_s18, 2  ;;  %p1270_p11 = por %p123_p7, %p41_p0 }
  0x17   : > { %p1274_p12 = por %p129_p8, %p47_p3  ;;  %s1279_s28 = sand.u32 1, %s1185_s17  }
  0x18   : > { %s1976_s26 = scalar_select %p1270_p11, 1, 0 }
  0x19   : > { %s1977_s27 = scalar_select %p1274_p12, 1, 0 }
  0x1a   : > { %s1282_s29 = sshll.u32 %s1189_s18, 7  ;;  %p1284_p13 = pnand %p930_p10, %p43_p5 }
  0x1b   : > { %s195_s5 = sand.u32 1, %s1189_s18   ;;  %s901_s6 = smul.u32 384, %s1279_s28 }
  0x1c   : > { %s1979_s1 = sld [smem:[#allocation19_spill]]  ;;  %p854_p0 = scmp.ge.s32.totalorder %s1189_s18, 1 }
  0x1d   : > { %p233_p1 = scmp.lt.s32.totalorder %s1189_s18, 3  ;;  %s199_s10 = scalar_lea.vmem [#allocation5], %s901_s6 }
  0x1e   : > { %s205_s11 = sshll.u32 %s199_s10, 4  ;;  %s1304_s13 = scalar_lea.sflag [#allocation6], %s195_s5  ;;  %s1298_s11 = int_to_ptr.vmem [resolvable:$true] %s205_s11 }
  0x1f   : > { %p1300_p2 = pnand %p854_p0, %p233_p1  ;;  %p1310_p4 = pneg %p1284_p13 }
  0x21   : > { %s1980_s12 = scalar_select %p1300_p2, 1, 0 }
  0x22   : > { %s1294_s9 = scalar_lea.hbm %s1979_s1, %s1282_s29  ;;  %s1012_s6 = scalar_lea.hbm %s1979_s1, 12288 }
  0x23   : > { %s1007_s14 = scalar_lea.hbm %s1294_s9, 6144  ;;  %p1013_p8 = scmp.lt.s32.totalorder %s1294_s9, %s1979_s1 }
  0x24   : > { %p1008_p3 = scmp.ne.s32.totalorder %s1294_s9, %s1007_s14  ;;  %p1014_p10 = scmp.lt.s32.totalorder %s1012_s6, %s1007_s14 }
  0x26   : > { %p1010_p5 = pnand %p1310_p4, %p1008_p3  ;;  %p1015_p0 = por %p1014_p10, %p1013_p8 }
  0x28   : > { %p1011_p7 = pneg %p1010_p5 }
  0x2a   : > { %p1016_p1 = pnand %p1015_p0, %p1011_p7 }
  0x2c   : > { %1019 = shalt.err (!%p1016_p1)
}
  0x2d   : > { %s1020_s5 = scalar_lea.vmem %s1298_s11, 6144  ;;  %s1191_s10 = smov [#allocation5]  }
  0x2e   : > { %p1021_p9 = scmp.ne.s32.totalorder %s1298_s11, %s1020_s5  ;;  %s1025_s22 = sshll.u32 %s1191_s10, 4  ;;  %s1026_s22 = int_to_ptr.vmem [resolvable:$false] %s1025_s22 }
  0x2f   : > { %s1027_s23 = scalar_lea.vmem %s1026_s22, 12288  ;;  %p1028_p12 = scmp.lt.s32.totalorder %s1298_s11, %s1026_s22 }
  0x30   : > { %p1023_p3 = pnand %p1021_p9, %p1310_p4  ;;  %p1029_p11 = scmp.lt.s32.totalorder %s1027_s23, %s1020_s5 }
  0x32   : > { %p1024_p5 = pneg %p1023_p3  ;;  %p1030_p6 = por %p1029_p11, %p1028_p12 }
  0x34   : > { %p1031_p2 = pnand %p1030_p6, %p1024_p5 }
  0x36   : > { %1034 = shalt.err (!%p1031_p2)
}
  0x37   : > { %s1968_s14 = smov 256   ;;  %s1193_s6 = smov 128  }
  0x38   : > { %s1194_s7 = smov 8   ;;  %s849_s8 = sshll.u32 %s1279_s28, 5 }
  0x39   : > { %919 = dma.hbm_to_vmem [thread:$0]  (!%p1284_p13), %s1294_s9, 6144, %s1298_s11, %s1304_s13, %s1968_s14, %s1193_s6, %s1194_s7  }
  0x3a   : > { %s1341_s22 = scalar_lea.hbm %s1957_s0, %s1282_s29  ;;  %s179_s1 = scalar_lea.vmem [#allocation2], %s849_s8 }
  0x3b   : > { %s185_s24 = sshll.u32 %s179_s1, 4  ;;  %s1350_s18 = scalar_lea.hbm %s1959_s2, %s1282_s29  ;;  %s1344_s24 = int_to_ptr.vmem [resolvable:$true] %s185_s24 }
  0x3c   : > { %s176_s9 = scalar_lea.sflag [#allocation3], %s1279_s28  ;;  %s1035_s11 = scalar_lea.hbm %s1341_s22, 512 }
  0x3d   : > { %p1036_p6 = scmp.ne.s32.totalorder %s1341_s22, %s1035_s11  ;;  %s1040_s14 = scalar_lea.hbm %s1957_s0, 1024 }
  0x3e   : > { %p1041_p12 = scmp.lt.s32.totalorder %s1341_s22, %s1957_s0  ;;  %p1042_p2 = scmp.lt.s32.totalorder %s1040_s14, %s1035_s11 }
  0x3f   : > { %p1038_p9 = pnand %p1036_p6, %p1310_p4 }
  0x40   : > { %p1043_p7 = por %p1042_p2, %p1041_p12 }
  0x41   : > { %p1039_p11 = pneg %p1038_p9 }
  0x43   : > { %p1044_p8 = pnand %p1043_p7, %p1039_p11 }
  0x45   : > { %1047 = shalt.err (!%p1044_p8)
}
  0x46   : > { %s1048_s1 = scalar_lea.vmem %s1344_s24, 512  ;;  %s1195_s17 = smov [#allocation2]  }
  0x47   : > { %p1049_p10 = scmp.ne.s32.totalorder %s1344_s24, %s1048_s1  ;;  %s1053_s21 = sshll.u32 %s1195_s17, 4  ;;  %s1054_s21 = int_to_ptr.vmem [resolvable:$false] %s1053_s21 }
  0x48   : > { %s1055_s29 = scalar_lea.vmem %s1054_s21, 1024  ;;  %p1056_p3 = scmp.lt.s32.totalorder %s1344_s24, %s1054_s21 }
  0x49   : > { %p1051_p0 = pnand %p1049_p10, %p1310_p4  ;;  %p1057_p5 = scmp.lt.s32.totalorder %s1055_s29, %s1048_s1 }
  0x4b   : > { %p1052_p1 = pneg %p1051_p0  ;;  %p1058_p6 = por %p1057_p5, %p1056_p3 }
  0x4d   : > { %p1059_p9 = pnand %p1058_p6, %p1052_p1 }
  0x4f   : > { %1062 = shalt.err (!%p1059_p9)
}
  0x50   : > { %s1982_s14 = smov 256   ;;  %s1983_s23 = sshll.u32 %s1279_s28, 4 }
  0x51   : > { %916 = dma.hbm_to_vmem [thread:$0]  (!%p1284_p13), %s1341_s22, 512, %s1344_s24, %s176_s9, %s1982_s14, %s1193_s6, %s1194_s7  }
  0x52   : > { %s219_s11 = scalar_lea.vmem [#allocation7], %s1983_s23  ;;  %s1063_s10 = scalar_lea.hbm %s1350_s18, 256 }
  0x53   : > { %s225_s5 = sshll.u32 %s219_s11, 4  ;;  %p1064_p11 = scmp.ne.s32.totalorder %s1350_s18, %s1063_s10  ;;  %s226_s5 = int_to_ptr.vmem [resolvable:$true] %s225_s5 }
  0x54   : > { %s1068_s17 = scalar_lea.hbm %s1959_s2, 512  ;;  %p1069_p7 = scmp.lt.s32.totalorder %s1350_s18, %s1959_s2 }
  0x55   : > { %p1066_p12 = pnand %p1064_p11, %p1310_p4  ;;  %p1070_p8 = scmp.lt.s32.totalorder %s1068_s17, %s1063_s10 }
  0x57   : > { %p1067_p2 = pneg %p1066_p12  ;;  %p1071_p10 = por %p1070_p8, %p1069_p7 }
  0x59   : > { %p1072_p0 = pnand %p1071_p10, %p1067_p2 }
  0x5b   : > { %1075 = shalt.err (!%p1072_p0)
}
  0x5c   : > { %s1076_s24 = scalar_lea.vmem %s226_s5, 256  ;;  %s1196_s28 = smov [#allocation7]  }
  0x5d   : > { %p1077_p1 = scmp.ne.s32.totalorder %s226_s5, %s1076_s24  ;;  %s1081_s22 = sshll.u32 %s1196_s28, 4  ;;  %s1082_s22 = int_to_ptr.vmem [resolvable:$false] %s1081_s22 }
  0x5e   : > { %s1083_s9 = scalar_lea.vmem %s1082_s22, 512  ;;  %p1084_p6 = scmp.lt.s32.totalorder %s226_s5, %s1082_s22 }
  0x5f   : > { %p1079_p3 = pnand %p1077_p1, %p1310_p4  ;;  %p1085_p9 = scmp.lt.s32.totalorder %s1083_s9, %s1076_s24 }
  0x61   : > { %p1080_p5 = pneg %p1079_p3  ;;  %p1086_p11 = por %p1085_p9, %p1084_p6 }
  0x63   : > { %p1087_p12 = pnand %p1086_p11, %p1080_p5 }
  0x65   : > { %1090 = shalt.err (!%p1087_p12)
}
  0x66   : > { %922 = dma.hbm_to_vmem [thread:$0]  (!%p1284_p13), %s1350_s18, 256, %s226_s5, %s1304_s13, %s1982_s14, %s1193_s6, %s1194_s7  }
  0x67   : > { %p1984_p4 = scmp.ne.s32.totalorder %s1980_s12, 0 }
  0x68   : > { %s1401_s20 = sand.u32 (!%p1984_p4), 1, %s1181_s16   ;;  %p1985_p2 = scmp.ne.s32.totalorder (!%p1984_p4), %s1975_s25, 0 }
  0x69   : > { %237 = sbr.rel (%p1984_p4) target bundleno = 257 (0x101), region = 32  ;;  %s855_s23 = sshll.u32 (!%p1984_p4), %s1401_s20, 5 }
  0x6a   : > { %s240_s11 = scalar_lea.sflag (!%p1984_p4), [#allocation3], %s1401_s20  ;;  %s243_s10 = scalar_lea.vmem (!%p1984_p4), [#allocation2], %s855_s23 }
  0x6e   : > { %1160 = dma.done.wait (%p1985_p2), %s240_s11, 512  }
  0x6f   : > { %1162 = vsyncadd (%p1985_p2), %s240_s11, 4294966784  ;;  %s248_s18 = sand.u32 1, %s1245_s19   ;;  %s902_s30 = smul.u32 384, %s1401_s20 }
  0x70   : > { %s249_s12 = scalar_lea.sflag [#allocation6], %s248_s18 }
  0x71   : > { %s1411_s13 = scalar_lea.vmem [#allocation5], %s902_s30 }
  0x72   : > { %1164 = dma.done.wait (%p1985_p2), %s249_s12, 6400  }
  0x73   : > { %1166 = vsyncadd (%p1985_p2), %s249_s12, 4294960896  ;;  %s856_s6 = sshll.u32 %s1401_s20, 4  ;;  %v1418_v0 = vld [vmem:[%s243_s10] sm:$0xff]  ;;  %v1420_v1 = vld [vmem:[%s243_s10 + $0x8] sm:$0xff]  ;;  %s897_s7 = sshll.u32 %s1245_s19, 4 }
  0x74   : > { %v1422_v2 = vld [vmem:[%s243_s10 + $0x10] sm:$0xff]  ;;  %v1424_v3 = vld [vmem:[%s243_s10 + $0x18] sm:$0xff]  ;;  %v1427_v4 = vld [vmem:[%s1411_s13] sm:$0xff]  ;;  %s261_s25 = scalar_lea.vmem [#allocation7], %s856_s6  ;;  %s298_s14 = scalar_lea.vmem [#allocation9], %s1401_s20 }
  0x75   : > { %v1430_v5 = vld [vmem:[%s1411_s13 + $0x8] sm:$0xff]  ;;  %v1433_v6 = vld [vmem:[%s1411_s13 + $0x10] sm:$0xff]  ;;  %v1440_v9 = vld [vmem:[%s1411_s13 + $0x18] sm:$0xff]  ;;  %v315_v10 = vsub.f32 %v1418_v0, %v1427_v4  ;;  %s709_s5 = sshll.u32 %s298_s14, 4  ;;  %s1711_s17 = scalar_lea.hbm %s1961_s4, %s897_s7  ;;  %s1713_s5 = int_to_ptr.vmem [resolvable:$true] %s709_s5 }
  0x76   : > { %v1435_v7 = vld [vmem:[%s261_s25] sm:$0xff]  ;;  %v1437_v8 = vld [vmem:[%s261_s25 + $0x8] sm:$0xff]  ;;  %v316_v11 = vsub.f32 %v1420_v1, %v1430_v5  ;;  %v317_v12 = vsub.f32 %v1422_v2, %v1433_v6  ;;  %v318_v13 = vsub.f32 %v1424_v3, %v1440_v9  ;;  %s684_s21 = scalar_lea.sflag [#allocation10], %s1401_s20  ;;  %s1091_s29 = scalar_lea.vmem %s1713_s5, 16 }
  0x77   : > { %v1451_v14 = vld [vmem:[%s1411_s13 + $0x40] sm:$0xff]  ;;  %v670_v15 = vadd.f32 %v1437_v8, %v1435_v7  ;;  %v319_v16 = vmul.f32 %v315_v10, %v315_v10  ;;  %v1456_v19 = vld [vmem:[%s1411_s13 + $0x48] sm:$0xff]  ;;  %v1459_v20 = vld [vmem:[%s1411_s13 + $0x50] sm:$0xff]  ;;  %vm305_vm1 = vcmp.gt.f32.partialorder %v1435_v7, 0.0  ;;  %vm306_vm2 = vcmp.gt.f32.partialorder %v1437_v8, 0.0  ;;  %p1092_p13 = scmp.ne.s32.totalorder %s1713_s5, %s1091_s29  ;;  %p1986_p7 = scmp.ne.s32.totalorder %s1976_s26, 0 }
  0x78   : > { %v320_v17 = vmul.f32 %v316_v11, %v316_v11  ;;  %v321_v18 = vmul.f32 %v317_v12, %v317_v12  ;;  %v1462_v21 = vld [vmem:[%s1411_s13 + $0x58] sm:$0xff]  ;;  %v357_v22 = vsub.f32 %v1418_v0, %v1451_v14  ;;  %v322_v23 = vmul.f32 %v318_v13, %v318_v13  ;;  %v1477_v33 = vld [vmem:[%s1411_s13 + $0x80] sm:$0xff]  ;;  %v1480_v34 = vld [vmem:[%s1411_s13 + $0x88] sm:$0xff]  ;;  %s1197_s24 = smov [#allocation9]  }
  0x79   : > { %v358_v24 = vsub.f32 %v1420_v1, %v1456_v19  ;;  %v359_v25 = vsub.f32 %v1422_v2, %v1459_v20  ;;  %v360_v26 = vsub.f32 %v1424_v3, %v1462_v21  ;;  %v1484_v35 = vld [vmem:[%s1411_s13 + $0x90] sm:$0xff]  ;;  %v1487_v36 = vld [vmem:[%s1411_s13 + $0x98] sm:$0xff]  ;;  %v1491_v37 = vld [vmem:[%s1411_s13 + $0xc0] sm:$0xff]  ;;  %v671_v39 = vrot.slane %v670_v15, 4  ;;  %p1093_p8 = pnand %p1092_p13, %p1986_p7  ;;  %s1095_s28 = sshll.u32 %s1197_s24, 4  ;;  %s1096_s28 = int_to_ptr.vmem [resolvable:$false] %s1095_s28 }
  0x7a   : > { %v1472_v27 = vadd.f32 %v321_v18, %v319_v16  ;;  %v361_v28 = vmul.f32 %v357_v22, %v357_v22  ;;  %v1474_v29 = vadd.f32 %v322_v23, %v320_v17  ;;  %v1494_v38 = vld [vmem:[%s1411_s13 + $0xc8] sm:$0xff]  ;;  %v411_v42 = vsub.f32 %v1418_v0, %v1477_v33  ;;  %v1514_v48 = vld [vmem:[%s1411_s13 + $0xd0] sm:$0xff]  ;;  %v1517_v49 = vld [vmem:[%s1411_s13 + $0xd8] sm:$0xff]  ;;  %s1097_s22 = scalar_lea.vmem %s1096_s28, 32  ;;  %p1098_p0 = scmp.lt.s32.totalorder %s1713_s5, %s1096_s28 }
  0x7b   : > { %v362_v30 = vmul.f32 %v358_v24, %v358_v24  ;;  %v363_v31 = vmul.f32 %v359_v25, %v359_v25  ;;  %v364_v32 = vmul.f32 %v360_v26, %v360_v26  ;;  %v412_v43 = vsub.f32 %v1420_v1, %v1480_v34  ;;  %v1522_v50 = vld [vmem:[%s1411_s13 + $0x100] sm:$0xff]  ;;  %v1525_v51 = vld [vmem:[%s1411_s13 + $0x108] sm:$0xff]  ;;  %v1530_v57 = vld [vmem:[%s1411_s13 + $0x110] sm:$0xff]  ;;  %p1094_p10 = pneg %p1093_p8  ;;  %p1099_p1 = scmp.lt.s32.totalorder %s1097_s22, %s1091_s29 }
  0x7c   : > { %967 = vrsqrt.f32 %v1472_v27  ;;  %v413_v44 = vsub.f32 %v1422_v2, %v1484_v35  ;;  %v414_v45 = vsub.f32 %v1424_v3, %v1487_v36  ;;  %v465_v46 = vsub.f32 %v1418_v0, %v1491_v37  ;;  %v1533_v58 = vld [vmem:[%s1411_s13 + $0x118] sm:$0xff] }
  0x7d   : > { %969 = vrsqrt.f32 %v1474_v29  ;;  %v1496_v40 = vadd.f32 %v363_v31, %v361_v28  ;;  %v1498_v41 = vadd.f32 %v364_v32, %v362_v30  ;;  %v466_v47 = vsub.f32 %v1420_v1, %v1494_v38  ;;  %p1100_p3 = por %p1099_p1, %p1098_p0 }
  0x7e   : > { %vm327_vm0 = vcmp.eq.f32.partialorder %v1472_v27, inf  ;;  %v1527_v52 = vadd.f32 %v671_v39, %v670_v15  ;;  %v415_v53 = vmul.f32 %v411_v42, %v411_v42  ;;  %v416_v54 = vmul.f32 %v412_v43, %v412_v43 }
  0x7f   : > { %971 = vrsqrt.f32 %v1496_v40  ;;  %v417_v55 = vmul.f32 %v413_v44, %v413_v44  ;;  %v418_v56 = vmul.f32 %v414_v45, %v414_v45  ;;  %v467_v59 = vsub.f32 %v1422_v2, %v1514_v48  ;;  %p1101_p5 = pnand %p1100_p3, %p1094_p10 }
  0x80   : > { %973 = vrsqrt.f32 %v1498_v41  ;;  %v468_v60 = vsub.f32 %v1424_v3, %v1517_v49  ;;  %v469_v61 = vmul.f32 %v465_v46, %v465_v46  ;;  %v470_v62 = vmul.f32 %v466_v47, %v466_v47 }
  0x81   : > { %v1541_v63 = vadd.f32 %v417_v55, %v415_v53  ;;  %v1543_v10 = vadd.f32 %v418_v56, %v416_v54  ;;  %v519_v11 = vsub.f32 %v1418_v0, %v1522_v50  ;;  %v520_v12 = vsub.f32 %v1420_v1, %v1525_v51  ;;  %v1584_v53 = vld [vmem:[%s1411_s13 + $0x140] sm:$0xff]  ;;  %v1587_v54 = vld [vmem:[%s1411_s13 + $0x148] sm:$0xff] }
  0x82   : > { %v471_v13 = vmul.f32 %v467_v59, %v467_v59  ;;  %v472_v15 = vmul.f32 %v468_v60, %v468_v60  ;;  %v521_v16 = vsub.f32 %v1422_v2, %v1530_v57  ;;  %v522_v17 = vsub.f32 %v1424_v3, %v1533_v58 }
  0x83   : > { %vm329_vm3 = vcmp.eq.f32.partialorder %v1472_v27, 0.0  ;;  %v330_v18 = vand.u32 2147483648, %v1472_v27  ;;  %vm334_vm4 = vcmp.eq.f32.partialorder %v1474_v29, inf  ;;  %975 = vrsqrt.f32 %v1541_v63 }
  0x84   : > { %vm336_vm5 = vcmp.eq.f32.partialorder %v1474_v29, 0.0  ;;  %v337_v22 = vand.u32 2147483648, %v1474_v29  ;;  %vm369_vm6 = vcmp.eq.f32.partialorder %v1496_v40, inf  ;;  %977 = vrsqrt.f32 %v1543_v10 }
  0x85   : > { %vm371_vm7 = vcmp.eq.f32.partialorder %v1496_v40, 0.0  ;;  %v1562_v23 = vadd.f32 %v471_v13, %v469_v61  ;;  %v1564_v24 = vadd.f32 %v472_v15, %v470_v62  ;;  %v523_v25 = vmul.f32 %v519_v11, %v519_v11  ;;  %v1599_v62 = vld [vmem:[%s1411_s13 + $0x150] sm:$0xff] }
  0x86   : > { %v372_v28 = vand.u32 2147483648, %v1496_v40  ;;  %v524_v30 = vmul.f32 %v520_v12, %v520_v12  ;;  %v525_v31 = vmul.f32 %v521_v16, %v521_v16  ;;  %v526_v32 = vmul.f32 %v522_v17, %v522_v17 }
  0x87   : > { %vm376_vm8 = vcmp.eq.f32.partialorder %v1498_v41, inf  ;;  %vm378_vm9 = vcmp.eq.f32.partialorder %v1498_v41, 0.0  ;;  %979 = vrsqrt.f32 %v1562_v23  ;;  %v379_v44 = vand.u32 2147483648, %v1498_v41 }
  0x88   : > { %vm423_vm10 = vcmp.eq.f32.partialorder %v1541_v63, inf  ;;  %981 = vrsqrt.f32 %v1564_v24  ;;  %vm425_vm11 = vcmp.eq.f32.partialorder %v1541_v63, 0.0  ;;  %v426_v46 = vand.u32 2147483648, %v1541_v63 }
  0x89   : > { %v968_v26 = vpop.eup %967  ;;  %vm430_vm12 = vcmp.eq.f32.partialorder %v1543_v10, inf  ;;  %v1581_v47 = vadd.f32 %v525_v31, %v523_v25  ;;  %vm432_vm13 = vcmp.eq.f32.partialorder %v1543_v10, 0.0  ;;  %v433_v60 = vand.u32 2147483648, %v1543_v10  ;;  %v1619_v25 = vld [vmem:[%s1411_s13 + $0x158] sm:$0xff] }
  0x8a   : > { %v970_v39 = vpop.eup %969  ;;  %v326_v42 = vmul.f32 %v968_v26, %v1472_v27  ;;  %v1596_v61 = vadd.f32 %v526_v32, %v524_v30  ;;  %v573_v17 = vsub.f32 %v1418_v0, %v1584_v53  ;;  %v575_v26 = vsub.f32 %v1422_v2, %v1599_v62 }
  0x8b   : > { %v333_v43 = vmul.f32 %v970_v39, %v1474_v29  ;;  %983 = vrsqrt.f32 %v1581_v47  ;;  %vm477_vm14 = vcmp.eq.f32.partialorder %v1562_v23, inf  ;;  %vm479_vm15 = vcmp.eq.f32.partialorder %v1562_v23, 0.0 }
  0x8c   : > { %v328_v45 = vsel %vm327_vm0, %v1472_v27, %v326_v42  ;;  %v972_v55 = vpop.eup %971  ;;  %985 = vrsqrt.f32 %v1596_v61  ;;  %v480_v42 = vand.u32 2147483648, %v1562_v23  ;;  %vm484_vm0 = vcmp.eq.f32.partialorder %v1564_v24, inf }
  0x8d   : > { %v331_v56 = vsel %vm329_vm3, %v330_v18, %v328_v45  ;;  %v335_v59 = vsel %vm334_vm4, %v1474_v29, %v333_v43  ;;  %v974_v11 = vpop.eup %973  ;;  %v368_v13 = vmul.f32 %v972_v55, %v1496_v40  ;;  %v574_v18 = vsub.f32 %v1420_v1, %v1587_v54 }
  0x8e   : > { %v338_v12 = vsel %vm336_vm5, %v337_v22, %v335_v59  ;;  %v339_v27 = vsel %vm305_vm1, %v331_v56, 0.0  ;;  %v375_v16 = vmul.f32 %v974_v11, %v1498_v41  ;;  %v576_v45 = vsub.f32 %v1424_v3, %v1619_v25 }
  0x8f   : > { %v340_v15 = vsel %vm306_vm2, %v338_v12, 0.0  ;;  %v370_v22 = vsel %vm369_vm6, %v1496_v40, %v368_v13  ;;  %v577_v55 = vmul.f32 %v573_v17, %v573_v17  ;;  %v579_v11 = vmul.f32 %v575_v26, %v575_v26 }
  0x90   : > { %v341_v29 = vadd.f32 %v340_v15, %v339_v27  ;;  %v373_v30 = vsel %vm371_vm7, %v372_v28, %v370_v22  ;;  %v377_v31 = vsel %vm376_vm8, %v1498_v41, %v375_v16  ;;  %v976_v40 = vpop.eup %975  ;;  %vm486_vm3 = vcmp.eq.f32.partialorder %v1564_v24, 0.0 }
  0x91   : > { %v380_v32 = vsel %vm378_vm9, %v379_v44, %v377_v31  ;;  %v381_v39 = vsel %vm305_vm1, %v373_v30, 0.0  ;;  %v978_v56 = vpop.eup %977  ;;  %v422_v41 = vmul.f32 %v976_v40, %v1541_v63  ;;  %v578_v44 = vmul.f32 %v574_v18, %v574_v18 }
  0x92   : > { %v342_v28 = vrot.slane %v341_v29, 4  ;;  %v382_v43 = vsel %vm306_vm2, %v380_v32, 0.0  ;;  %v429_v12 = vmul.f32 %v978_v56, %v1543_v10  ;;  %v487_v27 = vand.u32 2147483648, %v1564_v24 }
  0x93   : > { %v383_v59 = vadd.f32 %v382_v43, %v381_v39  ;;  %v580_v13 = vmul.f32 %v576_v45, %v576_v45  ;;  %v424_v16 = vsel %vm423_vm10, %v1541_v63, %v422_v41  ;;  %vm531_vm4 = vcmp.eq.f32.partialorder %v1581_v47, inf }
  0x94   : > { %v1648_v17 = vadd.f32 %v579_v11, %v577_v55  ;;  %v980_v22 = vpop.eup %979  ;;  %v343_v30 = vadd.f32 %v342_v28, %v341_v29  ;;  %v427_v18 = vsel %vm425_vm11, %v426_v46, %v424_v16  ;;  %v431_v26 = vsel %vm430_vm12, %v1543_v10, %v429_v12 }
  0x95   : > { %v384_v15 = vrot.slane %v383_v59, 4  ;;  %vm533_vm5 = vcmp.eq.f32.partialorder %v1581_v47, 0.0  ;;  %v982_v31 = vpop.eup %981  ;;  %v434_v39 = vsel %vm432_vm13, %v433_v60, %v431_v26  ;;  %v435_v40 = vsel %vm305_vm1, %v427_v18, 0.0 }
  0x96   : > { %v1660_v43 = vadd.f32 %v580_v13, %v578_v44  ;;  %v436_v63 = vsel %vm306_vm2, %v434_v39, 0.0  ;;  %v476_v46 = vmul.f32 %v980_v22, %v1562_v23  ;;  %v483_v29 = vmul.f32 %v982_v31, %v1564_v24 }
  0x97   : > { %v385_v32 = vadd.f32 %v384_v15, %v383_v59  ;;  %987 = vrsqrt.f32 %v1648_v17  ;;  %v437_v28 = vadd.f32 %v436_v63, %v435_v40  ;;  %v534_v45 = vand.u32 2147483648, %v1581_v47 }
  0x98   : > { %vm538_vm6 = vcmp.eq.f32.partialorder %v1596_v61, inf  ;;  %v673_v10 = vrot.slane %v1527_v52, 2  ;;  %v984_v60 = vpop.eup %983  ;;  %v478_v55 = vsel %vm477_vm14, %v1562_v23, %v476_v46  ;;  %v485_v56 = vsel %vm484_vm0, %v1564_v24, %v483_v29 }
  0x99   : > { %vm540_vm7 = vcmp.eq.f32.partialorder %v1596_v61, 0.0  ;;  %v541_v59 = vand.u32 2147483648, %v1596_v61  ;;  %v344_v41 = vrot.slane %v343_v30, 2  ;;  %v386_v44 = vrot.slane %v385_v32, 2  ;;  %v986_v13 = vpop.eup %985 }
  0x9a   : > { %v438_v11 = vrot.slane %v437_v28, 4  ;;  %v481_v12 = vsel %vm479_vm15, %v480_v42, %v478_v55  ;;  %v488_v15 = vsel %vm486_vm3, %v487_v27, %v485_v56  ;;  %v530_v22 = vmul.f32 %v984_v60, %v1581_v47 }
  0x9b   : > { %v489_v16 = vsel %vm305_vm1, %v481_v12, 0.0  ;;  %989 = vrsqrt.f32 %v1660_v43  ;;  %v490_v26 = vsel %vm306_vm2, %v488_v15, 0.0  ;;  %v537_v23 = vmul.f32 %v986_v13, %v1596_v61 }
  0x9c   : > { %v439_v18 = vadd.f32 %v438_v11, %v437_v28  ;;  %v674_v42 = vadd.f32 %v673_v10, %v1527_v52  ;;  %v491_v31 = vadd.f32 %v490_v26, %v489_v16  ;;  %v532_v24 = vsel %vm531_vm4, %v1581_v47, %v530_v22 }
  0x9d   : > { %v345_v27 = vadd.f32 %v344_v41, %v343_v30  ;;  %v387_v39 = vadd.f32 %v386_v44, %v385_v32  ;;  %v535_v40 = vsel %vm533_vm5, %v534_v45, %v532_v24  ;;  %v539_v63 = vsel %vm538_vm6, %v1596_v61, %v537_v23 }
  0x9e   : > { %v492_v46 = vrot.slane %v491_v31, 4  ;;  %v542_v29 = vsel %vm540_vm7, %v541_v59, %v539_v63  ;;  %v440_v52 = vrot.slane %v439_v18, 2  ;;  %v543_v28 = vsel %vm305_vm1, %v535_v40, 0.0 }
  0x9f   : > { %v544_v30 = vsel %vm306_vm2, %v542_v29, 0.0  ;;  %v675_v32 = vrot.slane %v674_v42, 1  ;;  %v346_v47 = vrot.slane %v345_v27, 1  ;;  %v388_v45 = vrot.slane %v387_v39, 1 }
  0xa0   : > { %v493_v10 = vadd.f32 %v492_v46, %v491_v31  ;;  %v545_v60 = vadd.f32 %v544_v30, %v543_v28  ;;  %v441_v55 = vadd.f32 %v440_v52, %v439_v18  ;;  %vm585_vm8 = vcmp.eq.f32.partialorder %v1648_v17, inf }
  0xa1   : > { %v676_v56 = vadd.f32 %v675_v32, %v674_v42  ;;  %v347_v44 = vadd.f32 %v346_v47, %v345_v27  ;;  %v389_v11 = vadd.f32 %v388_v45, %v387_v39 }
  0xa2   : > { %v546_v59 = vrot.slane %v545_v60, 4  ;;  %v494_v12 = vrot.slane %v493_v10, 2 }
  0xa3   : > { %678 = vst [vmem:[%s298_s14] sm:$0x1] %v676_v56 }
  0xa4   : > { %v988_v61 = vpop.eup %987 }
  0xa5   : > { %v584_v41 = vmul.f32 %v988_v61, %v1648_v17 }
  0xa6   : > { %1104 = shalt.err (!%p1101_p5)
}
  0xa7   : > { %s1105_s9 = scalar_lea.hbm %s1711_s17, 16  ;;  %s1109_s10 = scalar_lea.hbm %s1961_s4, 32 }
  0xa8   : > { %p1106_p6 = scmp.ne.s32.totalorder %s1711_s17, %s1105_s9  ;;  %p1110_p12 = scmp.lt.s32.totalorder %s1711_s17, %s1961_s4 }
  0xa9   : > { %p1111_p4 = scmp.lt.s32.totalorder %s1109_s10, %s1105_s9 }
  0xaa   : > { %p1107_p9 = pnand %p1106_p6, %p1986_p7 }
  0xab   : > { %p1112_p2 = por %p1111_p4, %p1110_p12 }
  0xac   : > { %p1108_p11 = pneg %p1107_p9 }
  0xae   : > { %p1113_p13 = pnand %p1112_p2, %p1108_p11 }
  0xb0   : > { %1116 = shalt.err (!%p1113_p13)
}
  0xb1   : > { %910 = dma.vmem_to_hbm [thread:$0]  (%p1986_p7), %s1713_s5, 16, %s1711_s17, %s684_s21   ;;  %v990_v13 = vpop.eup %989  ;;  %v442_v15 = vrot.slane %v441_v55, 1  ;;  %v547_v16 = vadd.f32 %v546_v59, %v545_v60  ;;  %v588_v22 = vand.u32 2147483648, %v1648_v17  ;;  %v586_v18 = vsel %vm585_vm8, %v1648_v17, %v584_v41  ;;  %v312_v45 = vld [vmem:[%s1411_s13 + $0x28] sm:$0xff]  ;;  %v313_v60 = vld [vmem:[%s1411_s13 + $0x30] sm:$0xff]  ;;  %v861_v61 = vld [vmem:[%s1411_s13 + $0x60] sm:$0xff] }
  0xb2   : > { %vm587_vm9 = vcmp.eq.f32.partialorder %v1648_v17, 0.0  ;;  %vm1743_vm10 = vcmp.lt.f32.partialorder %v389_v11, %v347_v44  ;;  %v495_v23 = vadd.f32 %v494_v12, %v493_v10  ;;  %vm592_vm11 = vcmp.eq.f32.partialorder %v1660_v43, inf  ;;  %v314_v59 = vld [vmem:[%s1411_s13 + $0x38] sm:$0xff]  ;;  %v863_v41 = vld [vmem:[%s1411_s13 + $0x70] sm:$0xff]  ;;  %s292_s12 = scalar_lea.vmem [#allocation8], %s1401_s20  ;;  %s694_s14 = scalar_lea.hbm %s1960_s3, %s897_s7 }
  0xb3   : > { %v595_v42 = vand.u32 2147483648, %v1660_v43  ;;  %v591_v31 = vmul.f32 %v990_v13, %v1660_v43  ;;  %vm594_vm12 = vcmp.eq.f32.partialorder %v1660_v43, 0.0  ;;  %v443_v24 = vadd.f32 %v442_v15, %v441_v55  ;;  %v862_v55 = vld [vmem:[%s1411_s13 + $0x68] sm:$0xff]  ;;  %s680_s5 = scalar_lea.sflag [#allocation4], %s1401_s20  ;;  %s1198_s1 = smov [#allocation8]  }
  0xb4   : > { %v548_v27 = vrot.slane %v547_v16, 2  ;;  %v589_v17 = vsel %vm587_vm9, %v588_v22, %v586_v18  ;;  %v391_v39 = vsel %vm1743_vm10, %v389_v11, %v347_v44  ;;  %v496_v63 = vrot.slane %v495_v23, 1  ;;  %v864_v44 = vld [vmem:[%s1411_s13 + $0x78] sm:$0xff]  ;;  %s1121_s17 = sshll.u32 %s1198_s1, 4  ;;  %s1122_s17 = int_to_ptr.vmem [resolvable:$false] %s1121_s17 }
  0xb5   : > { %v593_v40 = vsel %vm592_vm11, %v1660_v43, %v591_v31  ;;  %v597_v29 = vsel %vm305_vm1, %v589_v17, 0.0  ;;  %vm1756_vm13 = vcmp.lt.f32.partialorder %v443_v24, %v391_v39  ;;  %v311_v43 = vld [vmem:[%s1411_s13 + $0x20] sm:$0xff]  ;;  %v399_v15 = vsel %vm1743_vm10, %v862_v55, %v312_v45  ;;  %v872_v31 = vld [vmem:[%s1411_s13 + $0xb8] sm:$0xff]  ;;  %s1123_s21 = scalar_lea.vmem %s1122_s17, 32 }
  0xb6   : > { %v596_v46 = vsel %vm594_vm12, %v595_v42, %v593_v40  ;;  %v549_v28 = vadd.f32 %v548_v27, %v547_v16  ;;  %v497_v32 = vadd.f32 %v496_v63, %v495_v23  ;;  %v445_v10 = vsel %vm1756_vm13, %v443_v24, %v391_v39  ;;  %v869_v16 = vld [vmem:[%s1411_s13 + $0xa0] sm:$0xff]  ;;  %v870_v23 = vld [vmem:[%s1411_s13 + $0xa8] sm:$0xff]  ;;  %v871_v42 = vld [vmem:[%s1411_s13 + $0xb0] sm:$0xff] }
  0xb7   : > { %v598_v30 = vsel %vm306_vm2, %v596_v46, 0.0  ;;  %v398_v13 = vsel %vm1743_vm10, %v861_v61, %v311_v43  ;;  %v400_v22 = vsel %vm1743_vm10, %v863_v41, %v313_v60  ;;  %v401_v18 = vsel %vm1743_vm10, %v864_v44, %v314_v59  ;;  %v877_v40 = vld [vmem:[%s1411_s13 + $0xe0] sm:$0xff]  ;;  %v886_v59 = vld [vmem:[%s1411_s13 + $0x128] sm:$0xff]  ;;  %v887_v41 = vld [vmem:[%s1411_s13 + $0x130] sm:$0xff] }
  0xb8   : > { %v599_v47 = vadd.f32 %v598_v30, %v597_v29  ;;  %v550_v56 = vrot.slane %v549_v28, 1  ;;  %vm1772_vm14 = vcmp.lt.f32.partialorder %v497_v32, %v445_v10  ;;  %v452_v39 = vsel %vm1756_vm13, %v869_v16, %v398_v13  ;;  %v878_v30 = vld [vmem:[%s1411_s13 + $0xe8] sm:$0xff]  ;;  %v885_v60 = vld [vmem:[%s1411_s13 + $0x120] sm:$0xff]  ;;  %v888_v44 = vld [vmem:[%s1411_s13 + $0x138] sm:$0xff] }
  0xb9   : > { %v499_v17 = vsel %vm1772_vm14, %v497_v32, %v445_v10  ;;  %v453_v46 = vsel %vm1756_vm13, %v870_v23, %v399_v15  ;;  %v454_v29 = vsel %vm1756_vm13, %v871_v42, %v400_v22  ;;  %v879_v32 = vld [vmem:[%s1411_s13 + $0xf0] sm:$0xff]  ;;  %v506_v10 = vsel %vm1772_vm14, %v877_v40, %v452_v39  ;;  %v893_v15 = vld [vmem:[%s1411_s13 + $0x160] sm:$0xff]  ;;  %v896_v39 = vld [vmem:[%s1411_s13 + $0x178] sm:$0xff] }
  0xba   : > { %v600_v12 = vrot.slane %v599_v47, 4  ;;  %v551_v24 = vadd.f32 %v550_v56, %v549_v28  ;;  %v455_v28 = vsel %vm1756_vm13, %v872_v31, %v401_v18  ;;  %v507_v61 = vsel %vm1772_vm14, %v878_v30, %v453_v46  ;;  %v894_v31 = vld [vmem:[%s1411_s13 + $0x168] sm:$0xff] }
  0xbb   : > { %v508_v55 = vsel %vm1772_vm14, %v879_v32, %v454_v29  ;;  %v395_v40 = vsel %vm1743_vm10, %v1456_v19, %v1430_v5  ;;  %v397_v46 = vsel %vm1743_vm10, %v1462_v21, %v1440_v9 }
  0xbc   : > { %v601_v27 = vadd.f32 %v600_v12, %v599_v47  ;;  %v880_v47 = vld [vmem:[%s1411_s13 + $0xf8] sm:$0xff]  ;;  %vm1802_vm15 = vcmp.lt.f32.partialorder %v551_v24, %v499_v17  ;;  %v449_v9 = vsel %vm1756_vm13, %v1480_v34, %v395_v40  ;;  %v451_v30 = vsel %vm1756_vm13, %v1487_v36, %v397_v46 }
  0xbd   : > { %v509_v56 = vsel %vm1772_vm14, %v880_v47, %v455_v28  ;;  %v553_v13 = vsel %vm1802_vm15, %v551_v24, %v499_v17  ;;  %v560_v22 = vsel %vm1802_vm15, %v885_v60, %v506_v10  ;;  %v561_v18 = vsel %vm1802_vm15, %v886_v59, %v507_v61 }
  0xbe   : > { %v602_v63 = vrot.slane %v601_v27, 2  ;;  %v562_v23 = vsel %vm1802_vm15, %v887_v41, %v508_v55  ;;  %v563_v42 = vsel %vm1802_vm15, %v888_v44, %v509_v56  ;;  %v394_v24 = vsel %vm1743_vm10, %v1451_v14, %v1427_v4 }
  0xbf   : > { %v503_v32 = vsel %vm1772_vm14, %v1494_v38, %v449_v9 }
  0xc0   : > { %v603_v45 = vadd.f32 %v602_v63, %v601_v27  ;;  %v895_v27 = vld [vmem:[%s1411_s13 + $0x170] sm:$0xff]  ;;  %v396_v63 = vsel %vm1743_vm10, %v1459_v20, %v1433_v6  ;;  %v448_v6 = vsel %vm1756_vm13, %v1477_v33, %v394_v24  ;;  %s696_s13 = sshll.u32 %s292_s12, 4  ;;  %s697_s13 = int_to_ptr.vmem [resolvable:$true] %s696_s13 }
  0xc1   : > { %v450_v28 = vsel %vm1756_vm13, %v1484_v35, %v396_v63  ;;  %v502_v33 = vsel %vm1772_vm14, %v1491_v37, %v448_v6  ;;  %v505_v35 = vsel %vm1772_vm14, %v1517_v49, %v451_v30  ;;  %v557_v37 = vsel %vm1802_vm15, %v1525_v51, %v503_v32  ;;  %s1117_s8 = scalar_lea.vmem %s697_s13, 16  ;;  %p1124_p1 = scmp.lt.s32.totalorder %s697_s13, %s1122_s17 }
  0xc2   : > { %v604_v12 = vrot.slane %v603_v45, 1  ;;  %v504_v34 = vsel %vm1772_vm14, %v1514_v48, %v450_v28  ;;  %v556_v36 = vsel %vm1802_vm15, %v1522_v50, %v502_v33  ;;  %v559_v48 = vsel %vm1802_vm15, %v1533_v58, %v505_v35  ;;  %p1118_p8 = scmp.ne.s32.totalorder %s697_s13, %s1117_s8  ;;  %p1125_p3 = scmp.lt.s32.totalorder %s1123_s21, %s1117_s8 }
  0xc3   : > { %v558_v38 = vsel %vm1802_vm15, %v1530_v57, %v504_v34 }
  0xc4   : > { %v605_v16 = vadd.f32 %v604_v12, %v603_v45  ;;  %p1119_p10 = pnand %p1118_p8, %p1986_p7  ;;  %p1126_p5 = por %p1125_p3, %p1124_p1 }
  0xc6   : > { %vm1836_vm0 = vcmp.lt.f32.partialorder %v605_v16, %v553_v13  ;;  %p1120_p0 = pneg %p1119_p10 }
  0xc7   : > { %v613_v4 = vsel %vm1836_vm0, %v893_v15, %v560_v22  ;;  %v614_v14 = vsel %vm1836_vm0, %v894_v31, %v561_v18  ;;  %v615_v29 = vsel %vm1836_vm0, %v895_v27, %v562_v23  ;;  %v616_v5 = vsel %vm1836_vm0, %v896_v39, %v563_v42 }
  0xc8   : > { %v617_v19 = vmax.f32 %v613_v4, 1e-06  ;;  %v618_v20 = vmax.f32 %v614_v14, 1e-06  ;;  %v619_v26 = vmax.f32 %v615_v29, 1e-06  ;;  %v609_v49 = vsel %vm1836_vm0, %v1584_v53, %v556_v36  ;;  %p1127_p6 = pnand %p1126_p5, %p1120_p0 }
  0xc9   : > { %v620_v21 = vmax.f32 %v616_v5, 1e-06  ;;  %v610_v50 = vsel %vm1836_vm0, %v1587_v54, %v557_v37  ;;  %v611_v51 = vsel %vm1836_vm0, %v1599_v62, %v558_v38  ;;  %v612_v57 = vsel %vm1836_vm0, %v1619_v25, %v559_v48 }
  0xca   : > { %991 = vlog2.f32 %v617_v19  ;;  %v633_v52 = vsub.f32 %v1418_v0, %v609_v49  ;;  %v634_v58 = vsub.f32 %v1420_v1, %v610_v50  ;;  %v635_v11 = vsub.f32 %v1422_v2, %v611_v51 }
  0xcb   : > { %993 = vlog2.f32 %v618_v20  ;;  %v636_v47 = vsub.f32 %v1424_v3, %v612_v57 }
  0xcc   : > { %995 = vlog2.f32 %v619_v26  ;;  %v637_v54 = vand.u32 2147483647, %v633_v52  ;;  %v638_v61 = vand.u32 2147483647, %v634_v58  ;;  %v639_v59 = vand.u32 2147483647, %v635_v11 }
  0xcd   : > { %997 = vlog2.f32 %v620_v21  ;;  %v640_v44 = vand.u32 2147483647, %v636_v47 }
  0xce   : > { %999 = vrcp.f32 %v617_v19 }
  0xcf   : > { %1001 = vrcp.f32 %v618_v20 }
  0xd0   : > { %1003 = vrcp.f32 %v619_v26 }
  0xd1   : > { %1005 = vrcp.f32 %v620_v21 }
  0xd7   : > { %v992_v53 = vpop.eup %991 }
  0xd8   : > { %v994_v43 = vpop.eup %993  ;;  %v622_v45 = vmul.f32 0.6931472, %v992_v53 }
  0xd9   : > { %v996_v10 = vpop.eup %995  ;;  %v624_v60 = vmul.f32 0.6931472, %v994_v43 }
  0xda   : > { %v998_v62 = vpop.eup %997  ;;  %v626_v55 = vmul.f32 0.6931472, %v996_v10  ;;  %v629_v56 = vadd.f32 0.6931472, %v622_v45 }
  0xdb   : > { %v1000_v25 = vpop.eup %999  ;;  %v628_v41 = vmul.f32 0.6931472, %v998_v62  ;;  %v630_v0 = vadd.f32 0.6931472, %v624_v60 }
  0xdc   : > { %v1002_v1 = vpop.eup %1001  ;;  %v631_v12 = vadd.f32 0.6931472, %v626_v55  ;;  %v642_v2 = vmul.f32 %v1000_v25, %v637_v54 }
  0xdd   : > { %v1004_v13 = vpop.eup %1003  ;;  %v632_v15 = vadd.f32 0.6931472, %v628_v41  ;;  %v644_v3 = vmul.f32 %v1002_v1, %v638_v61 }
  0xde   : > { %v1006_v16 = vpop.eup %1005  ;;  %v646_v22 = vmul.f32 %v1004_v13, %v639_v59  ;;  %v649_v18 = vadd.f32 %v642_v2, %v629_v56 }
  0xdf   : > { %v648_v23 = vmul.f32 %v1006_v16, %v640_v44  ;;  %v650_v42 = vadd.f32 %v644_v3, %v630_v0 }
  0xe0   : > { %v651_v31 = vadd.f32 %v646_v22, %v631_v12  ;;  %v657_v27 = vsel %vm305_vm1, %v649_v18, 0.0 }
  0xe1   : > { %v652_v39 = vadd.f32 %v648_v23, %v632_v15  ;;  %v658_v24 = vsel %vm306_vm2, %v650_v42, 0.0 }
  0xe2   : > { %v659_v17 = vsel %vm305_vm1, %v651_v31, 0.0 }
  0xe3   : > { %v660_v40 = vsel %vm306_vm2, %v652_v39, 0.0  ;;  %v661_v63 = vadd.f32 %v659_v17, %v657_v27 }
  0xe4   : > { %v662_v46 = vadd.f32 %v660_v40, %v658_v24 }
  0xe6   : > { %v663_v4 = vadd.f32 %v662_v46, %v661_v63 }
  0xe8   : > { %v664_v14 = vrot.slane %v663_v4, 4 }
  0xea   : > { %v665_v29 = vadd.f32 %v664_v14, %v663_v4 }
  0xec   : > { %v666_v5 = vrot.slane %v665_v29, 2 }
  0xee   : > { %v667_v6 = vadd.f32 %v666_v5, %v665_v29 }
  0xf0   : > { %v668_v19 = vrot.slane %v667_v6, 1 }
  0xf2   : > { %v669_v20 = vadd.f32 %v668_v19, %v667_v6 }
  0xf4   : > { %677 = vst [vmem:[%s292_s12] sm:$0x1] %v669_v20 }
  0xf5   : > { %1130 = shalt.err (!%p1127_p6)
}
  0xf6   : > { %s1131_s19 = scalar_lea.hbm %s694_s14, 16  ;;  %s1135_s29 = scalar_lea.hbm %s1960_s3, 32 }
  0xf7   : > { %p1132_p9 = scmp.ne.s32.totalorder %s694_s14, %s1131_s19  ;;  %p1136_p4 = scmp.lt.s32.totalorder %s694_s14, %s1960_s3 }
  0xf8   : > { %p1137_p2 = scmp.lt.s32.totalorder %s1135_s29, %s1131_s19 }
  0xf9   : > { %p1133_p11 = pnand %p1132_p9, %p1986_p7 }
  0xfa   : > { %p1138_p13 = por %p1137_p2, %p1136_p4 }
  0xfb   : > { %p1134_p12 = pneg %p1133_p11 }
  0xfd   : > { %p1139_p8 = pnand %p1138_p13, %p1134_p12 }
  0xff   : > { %1142 = shalt.err (!%p1139_p8)
}
 0x100   : > { %909 = dma.vmem_to_hbm [thread:$0]  (%p1986_p7), %s697_s13, 16, %s694_s14, %s680_s5  }
 0x101 PF: > { %s1997_s22 = sld [smem:[#allocation16_spill]]  ;;  %s721_s9 = sand.u32 1, %s1177_s15  }
 0x102   : > { %p1998_p10 = scmp.ne.s32.totalorder %s1977_s27, 0  ;;  %s722_s23 = scalar_lea.sflag [#allocation4], %s721_s9 }
 0x107   : > { %p1999_p0 = scmp.ge.s32.totalorder %s1997_s22, 2 }
 0x109   : > { %p924_p1 = pnand %p1999_p0, %p1998_p10 }
 0x10b   : > { %p925_p3 = pneg %p924_p1 }
 0x10d   : > { %1168 = dma.done.wait (%p925_p3), %s722_s23, 16  }
 0x10e   : > { %1170 = vsyncadd (%p925_p3), %s722_s23, 4294967280  ;;  %s730_s11 = scalar_lea.sflag [#allocation10], %s721_s9 }
 0x10f   : > { %1172 = dma.done.wait (%p925_p3), %s730_s11, 16  }
 0x110   : > { %1174 = vsyncadd (%p925_p3), %s730_s11, 4294967280  ;;  %s2000_s18 = sld [smem:[#allocation17_spill]]  ;;  %s2003_s15 = smov %s1181_s16 }
 0x111   : > { %s2001_s10 = sld [smem:[#allocation15_spill]] }
 0x112   : > { %s2002_s17 = sld [smem:[#allocation18_spill]] }
 0x116   : > { %p24_p7 = scmp.ge.s32.totalorder %s2000_s18, 4  }
 0x117   : > { %s2004_s16 = smov %s2001_s10 }
 0x118   :  { %26 = sbr.rel (!%p24_p7) target bundleno = 11 (0xb), region = 123 }
 0x11d   :  { %734 = vsyncpa [#allocation3], 1 }
 0x11e   :  { %736 = vsyncpa [#allocation3 + $0x1], 1 }
 0x11f   :  { %737 = vsyncpa [#allocation6], 1 }
 0x120   :  { %739 = vsyncpa [#allocation6 + $0x1], 1 }
 0x121   :  { %740 = vsyncpa [#allocation4], 1 }
 0x122   :  { %742 = vsyncpa [#allocation4 + $0x1], 1 }
 0x123   :  { %743 = vsyncpa [#allocation10], 1 }
 0x124   :  { %745 = vsyncpa [#allocation10 + $0x1], 1 }

</bundles_post_ra>
